<compile_context>
chip_gen: v6e
topology: v6e:2x2x1
jax: 0.10.0
libtpu: 0.0.40
codegen_flags: <defaults>
</compile_context>

<pallas_src>
import functools

import jax
import jax.numpy as jnp
from jax.experimental import pallas as pl
from jax.experimental.pallas import tpu as pltpu


_EPS = 1e-5


def _vmem_capacity_bytes():
    """Physical VMEM per core; falls back to the most restrictive (v7x, 64 MiB)."""
    try:
        info = pltpu.get_tpu_info()
        for name in ("vmem_capacity_bytes", "vmem_size_bytes", "vmem_bytes"):
            v = getattr(info, name, None)
            if v:
                return int(v)
    except Exception:
        pass
    return 64 << 20


# ------------------------------- kernels -------------------------------------


def _fcm_single_kernel(feat_ref, scale_ref, bias_ref, w1_ref, w2_ref, out_ref,
                       *, inv_hw):
    """Whole (C, HWp) tile per batch element; one-pass instance-norm stats."""
    # conv1 (1x1): (Ch, C) @ (C, HWp) -> (Ch, HWp), f32 accumulation on the MXU.
    # conv1's bias is omitted: it cancels under the instance-norm mean/var.
    x1 = jnp.dot(w1_ref[...], feat_ref[...],
                 preferred_element_type=jnp.float32)
    # Stats over HW (lane axis).  Zero-padded lanes contribute 0 to both sums
    # and inv_hw = 1/true_HW, so lane padding is exact.
    mean = jnp.sum(x1, axis=-1, keepdims=True) * inv_hw
    mean_sq = jnp.sum(x1 * x1, axis=-1, keepdims=True) * inv_hw
    var = mean_sq - mean * mean + _EPS      # biased var + eps, as in the module
    inv_std = jax.lax.rsqrt(var + _EPS)     # second eps matches cin() exactly
    s_eff = scale_ref[...] * inv_std        # (Ch, 1)
    xn = ((x1 - mean) * s_eff).astype(w2_ref.dtype)
    # conv2 (1x1) + residual; `shift` and conv2's bias are folded into bias_ref.
    delta = jnp.dot(w2_ref[...], xn, preferred_element_type=jnp.float32)
    out_ref[...] = (feat_ref[...].astype(jnp.float32) + delta
                    + bias_ref[...]).astype(out_ref.dtype)


def _fcm_stats_kernel(feat_ref, w1_ref, sum_ref, sq_ref):
    """Accumulate per-channel sum / sum-of-squares of conv1(feature) over HW tiles."""
    t = pl.program_id(1)

    @pl.when(t == 0)
    def _():
        sum_ref[...] = jnp.zeros_like(sum_ref)
        sq_ref[...] = jnp.zeros_like(sq_ref)

    x1 = jnp.dot(w1_ref[...], feat_ref[...],
                 preferred_element_type=jnp.float32)
    sum_ref[...] += jnp.sum(x1, axis=-1, keepdims=True)
    sq_ref[...] += jnp.sum(x1 * x1, axis=-1, keepdims=True)


def _fcm_apply_kernel(feat_ref, seff_ref, bias_ref, w1_ref, w2_ref, out_ref):
    """Streaming apply: mean/shift/biases are pre-folded into seff_ref/bias_ref."""
    x1 = jnp.dot(w1_ref[...], feat_ref[...],
                 preferred_element_type=jnp.float32)
    xn = (x1 * seff_ref[...]).astype(w2_ref.dtype)
    delta = jnp.dot(w2_ref[...], xn, preferred_element_type=jnp.float32)
    out_ref[...] = (feat_ref[...].astype(jnp.float32) + delta
                    + bias_ref[...]).astype(out_ref.dtype)


# ------------------------------- wrapper --------------------------------------


def fcm_forward(feature_nchw, guide, params, begin_param, end_param,
                io_dtype=jnp.bfloat16, hw_tile=None):
    """FCM forward.  feature_nchw: (N, C, H, W); guide: (N, G) -> (N, C, H, W).

    bf16 is the default HBM boundary for the big tensors (the kernel is
    bandwidth bound); pass io_dtype=jnp.float32 for exact module numerics.
    hw_tile forces the HW-tiled (stats + apply) path with that tile width.
    Note: with bf16 I/O the residual identity path is round-tripped through
    bf16; stacked FCM blocks that need drift-free residuals should use f32.
    """
    N, C, H, W = feature_nchw.shape
    assert C % 2 == 0
    Ch = C // 2
    HW = H * W
    half = (end_param - begin_param) // 2
    assert half == Ch, "guide slice width must equal channel_size // 2"

    # ---- tiny guide MLP (fc1 -> relu -> fc2), hoisted into XLA ---------------
    def mlp(v):
        h = jnp.maximum(v @ params["fc1_w"].T + params["fc1_b"], 0.0)
        return h @ params["fc2_w"].T + params["fc2_b"]

    scale = mlp(guide[:, begin_param:begin_param + half]).astype(jnp.float32)  # (N, Ch)
    shift = mlp(guide[:, begin_param + half:end_param]).astype(jnp.float32)    # (N, Ch)

    # PyTorch conv weights (out, in, 1, 1) -> left-multiply (out, in) layout.
    w1 = params["conv1_w"].reshape(Ch, C).astype(jnp.float32)
    w2 = params["conv2_w"].reshape(C, Ch).astype(jnp.float32)
    b2 = params["conv2_b"].reshape(1, C).astype(jnp.float32)
    # conv1's bias is dropped: a per-channel constant added before instance
    # norm is removed by the mean subtraction and leaves the variance unchanged.
    w1_k = w1.astype(io_dtype)          # MXU operands match the feature dtype
    w2_k = w2.astype(io_dtype)

    # ---- path selection: single (C, HW) block vs HW-tiled --------------------
    io_bytes = jnp.dtype(io_dtype).itemsize
    hw_pad128 = ((HW + 127) // 128) * 128
    # Per-lane working set: double-buffered in+out plus f32 intermediates.
    lane_bytes = 4 * C * io_bytes + (2 * Ch + 2 * C) * 4
    step_bytes = lane_bytes * hw_pad128

    vmem_cap = _vmem_capacity_bytes()
    # Headroom for Mosaic internal scratch + resident weights: ~40 MiB usable
    # on 64 MiB parts (v7x), ~104 MiB on 128 MiB parts (v5e/v6e).
    single_cap = max(vmem_cap - (24 << 20), 40 << 20)
    use_tiled = (hw_tile is not None) or (step_bytes + (8 << 20) > single_cap)

    if not use_tiled:
        # -------------------- single-block path ------------------------------
        HWp = hw_pad128
        feat = feature_nchw.reshape(N, C, HW).astype(io_dtype)
        if HWp != HW:
            feat = jnp.pad(feat, ((0, 0), (0, 0), (0, HWp - HW)))
        scale3 = scale[..., None]                       # (N, Ch, 1)
        bias2 = (shift @ w2.T + b2)[..., None]          # (N, C, 1) = w2@shift + b2

        per_batch = lambda shp: pl.BlockSpec((pl.Squeezed(),) + shp,
                                             lambda b: (b, 0, 0))
        const2d = lambda shp: pl.BlockSpec(shp, lambda b: (0, 0))

        # Always set an explicit limit (covers v5e's 16 MiB default scoped VMEM).
        vmem_limit = int(min(single_cap, max(32 << 20, step_bytes + (8 << 20))))
        # TODO(synk): when N == 1 on v7x (2 TCs) this path leaves one core idle;
        # split HW across cores with a partial-stats combine if that matters.
        out = pl.pallas_call(
            functools.partial(_fcm_single_kernel, inv_hw=1.0 / HW),
            out_shape=jax.ShapeDtypeStruct((N, C, HWp), io_dtype),
            grid_spec=pltpu.PrefetchScalarGridSpec(
                num_scalar_prefetch=0,
                grid=(N,),
                in_specs=[
                    per_batch((C, HWp)),        # feature
                    per_batch((Ch, 1)),         # scale
                    per_batch((C, 1)),          # folded bias (w2@shift + b2)
                    const2d((Ch, C)),           # conv1 weight (resident)
                    const2d((C, Ch)),           # conv2 weight (resident)
                ],
                out_specs=per_batch((C, HWp)),
            ),
            input_output_aliases={0: 0},        # residual written in place
            compiler_params=pltpu.CompilerParams(
                dimension_semantics=("parallel",),
                vmem_limit_bytes=vmem_limit),
        )(feat, scale3, bias2, w1_k, w2_k)
        if HWp != HW:
            out = out[:, :, :HW]
        return out.reshape(N, C, H, W)

    # ---------------------- HW-tiled path: stats + apply ----------------------
    if hw_tile is not None:
        T = max(128, (int(hw_tile) // 128) * 128)
    else:
        budget = 12 << 20                       # per-step working-set target
        T = max(128, min(8192, (budget // lane_bytes) // 128 * 128))
    T = min(T, hw_pad128)
    HWp = ((HW + T - 1) // T) * T
    n_t = HWp // T

    feat = feature_nchw.reshape(N, C, HW).astype(io_dtype)
    if HWp != HW:
        feat = jnp.pad(feat, ((0, 0), (0, 0), (0, HWp - HW)))

    feat_spec = pl.BlockSpec((pl.Squeezed(), C, T), lambda b, t: (b, 0, t))
    const2d = lambda shp: pl.BlockSpec(shp, lambda b, t: (0, 0))
    per_batch_col = lambda rows: pl.BlockSpec((pl.Squeezed(), rows, 1),
                                              lambda b, t: (b, 0, 0))

    tiled_vmem = int(min(single_cap,
                         max(32 << 20, 2 * lane_bytes * T + (8 << 20))))

    # Pass 1: per-channel sum / sum-of-squares of conv1(feature), accumulated
    # across HW tiles directly into the resident output blocks.
    # TODO(synk): for N == 1 on v7x, split this reduction across the two cores
    # (per-core partial sums + cheap combine) so both TCs stream HBM.
    sum_x1, sq_x1 = pl.pallas_call(
        _fcm_stats_kernel,
        out_shape=(jax.ShapeDtypeStruct((N, Ch, 1), jnp.float32),
                   jax.ShapeDtypeStruct((N, Ch, 1), jnp.float32)),
        grid_spec=pltpu.PrefetchScalarGridSpec(
            num_scalar_prefetch=0,
            grid=(N, n_t),
            in_specs=[feat_spec, const2d((Ch, C))],
            out_specs=[per_batch_col(Ch), per_batch_col(Ch)],
        ),
        compiler_params=pltpu.CompilerParams(
            dimension_semantics=("parallel", "arbitrary"),
            vmem_limit_bytes=tiled_vmem),
    )(feat, w1_k)

    inv_hw = 1.0 / HW
    mean = sum_x1 * inv_hw                                    # (N, Ch, 1)
    var = sq_x1 * inv_hw - mean * mean + _EPS                 # biased var + eps
    s_eff = scale[..., None] * jax.lax.rsqrt(var + _EPS)      # scale / std
    # (x1 - mean)*s_eff + shift pushed through conv2:
    #   delta = w2 @ (x1 * s_eff) + [w2 @ (shift - mean * s_eff) + b2]
    bias_total = (jnp.einsum("co,nol->ncl", w2, shift[..., None] - mean * s_eff)
                  + b2.reshape(1, C, 1))

    # Pass 2: streaming apply, fully parallel over (batch, HW tile).
    out = pl.pallas_call(
        _fcm_apply_kernel,
        out_shape=jax.ShapeDtypeStruct((N, C, HWp), io_dtype),
        grid_spec=pltpu.PrefetchScalarGridSpec(
            num_scalar_prefetch=0,
            grid=(N, n_t),
            in_specs=[
                feat_spec,              # feature tile
                per_batch_col(Ch),      # scale / std
                per_batch_col(C),       # folded bias
                const2d((Ch, C)),       # conv1 weight (resident)
                const2d((C, Ch)),       # conv2 weight (resident)
            ],
            out_specs=feat_spec,
        ),
        input_output_aliases={0: 0},    # residual written in place
        compiler_params=pltpu.CompilerParams(
            dimension_semantics=("parallel", "parallel"),
            vmem_limit_bytes=tiled_vmem),
    )(feat, s_eff, bias_total, w1_k, w2_k)
    if HWp != HW:
        out = out[:, :, :HW]
    return out.reshape(N, C, H, W)


# ------------------------------- reference ------------------------------------


def fcm_reference(feature_nchw, guide, params, begin_param, end_param):
    """Pure-JAX reference mirroring the PyTorch forward (for verification)."""
    N, C, H, W = feature_nchw.shape
    Ch = C // 2
    half = (end_param - begin_param) // 2

    w1 = params["conv1_w"].reshape(Ch, C)
    x = jnp.einsum("nchw,oc->nohw", feature_nchw, w1) \
        + params["conv1_b"][None, :, None, None]

    def mlp(v):
        h = jnp.maximum(v @ params["fc1_w"].T + params["fc1_b"], 0.0)
        return h @ params["fc2_w"].T + params["fc2_b"]

    scale = mlp(guide[:, begin_param:begin_param + half]).reshape(N, Ch, 1, 1)
    shift = mlp(guide[:, begin_param + half:end_param]).reshape(N, Ch, 1, 1)

    mean = x.mean(axis=(2, 3), keepdims=True)
    var = ((x - mean) ** 2).mean(axis=(2, 3), keepdims=True) + 1e-5
    xn = (x - mean) / jnp.sqrt(var + 1e-5)
    xc = xn * scale + shift

    w2 = params["conv2_w"].reshape(C, Ch)
    delta = jnp.einsum("nchw,oc->nohw", xc, w2) \
        + params["conv2_b"][None, :, None, None]
    return feature_nchw + delta


if __name__ == "__main__":
    # Small shapes consistent with the module.
    N, C, H, W = 2, 8, 16, 16
    G = 16
    begin_param, end_param = 4, 12          # (end - begin) == C; halves == C//2
    Ch = C // 2

    key = jax.random.PRNGKey(0)
    keys = jax.random.split(key, 10)
    feature = jax.random.normal(keys[0], (N, C, H, W), jnp.float32)
    guide = jax.random.normal(keys[1], (N, G), jnp.float32)

    params = {
        "conv1_w": 0.2 * jax.random.normal(keys[2], (Ch, C, 1, 1), jnp.float32),
        "conv1_b": 0.1 * jax.random.normal(keys[3], (Ch,), jnp.float32),
        "fc1_w":   0.2 * jax.random.normal(keys[4], (Ch, Ch), jnp.float32),
        "fc1_b":   0.1 * jax.random.normal(keys[5], (Ch,), jnp.float32),
        "fc2_w":   0.2 * jax.random.normal(keys[6], (Ch, Ch), jnp.float32),
        "fc2_b":   0.1 * jax.random.normal(keys[7], (Ch,), jnp.float32),
        "conv2_w": 0.2 * jax.random.normal(keys[8], (C, Ch, 1, 1), jnp.float32),
        "conv2_b": 0.1 * jax.random.normal(keys[9], (C,), jnp.float32),
    }

    ref = fcm_reference(feature, guide, params, begin_param, end_param)

    # (1) f32 I/O, single-block path: matches the module numerics tightly.
    out_f32 = jax.block_until_ready(
        fcm_forward(feature, guide, params, begin_param, end_param,
                    io_dtype=jnp.float32))
    assert out_f32.shape == ref.shape == (N, C, H, W)
    assert jnp.allclose(out_f32, ref, atol=1e-4, rtol=1e-4), \
        "f32 single-block mismatch vs reference"

    # (2) f32 I/O, forced HW-tiled path (stats pass + apply pass).
    out_tiled = jax.block_until_ready(
        fcm_forward(feature, guide, params, begin_param, end_param,
                    io_dtype=jnp.float32, hw_tile=128))
    assert jnp.allclose(out_tiled, ref, atol=1e-4, rtol=1e-4), \
        "f32 tiled mismatch vs reference"

    # (3) default bf16 HBM boundary (bandwidth-bound win); compute stays f32.
    out_bf16 = jax.block_until_ready(
        fcm_forward(feature, guide, params, begin_param, end_param))
    assert out_bf16.dtype == jnp.bfloat16
    assert jnp.allclose(out_bf16.astype(jnp.float32), ref, atol=2e-1, rtol=1e-1), \
        "bf16 mismatch vs reference"

    print("KERNEL_OK")
</pallas_src>

<mosaic_0001>
module attributes {stable_mosaic.version = 11 : i64} {
  func.func @_fcm_single_kernel(%arg0: i32, %arg1: memref<1x8x256xf32, #tpu.memory_space<vmem>>, %arg2: memref<1x4x1xf32, #tpu.memory_space<vmem>>, %arg3: memref<1x8x1xf32, #tpu.memory_space<vmem>>, %arg4: memref<4x8xf32, #tpu.memory_space<vmem>>, %arg5: memref<8x4xf32, #tpu.memory_space<vmem>>, %arg6: memref<1x8x256xf32, #tpu.memory_space<vmem>>) attributes {dimension_semantics = [#tpu.dimension_semantics<parallel>], iteration_bounds = array<i64: 2>, scalar_prefetch = 0 : i64, scratch_operands = 0 : i64, tpu.core_type = #tpu.core_type<tc>, window_params = [{transform_indices = @transform_0, window_bounds = array<i64: 1, 8, 256>}, {transform_indices = @transform_1, window_bounds = array<i64: 1, 4, 1>}, {transform_indices = @transform_2, window_bounds = array<i64: 1, 8, 1>}, {pipeline_mode = #tpu.pipeline_mode<synchronous>, transform_indices = @transform_3, window_bounds = array<i64: 4, 8>}, {pipeline_mode = #tpu.pipeline_mode<synchronous>, transform_indices = @transform_4, window_bounds = array<i64: 8, 4>}, {transform_indices = @transform_5, window_bounds = array<i64: 1, 8, 256>}]} {
    %c0 = arith.constant 0 : index
    %c0_0 = arith.constant 0 : index
    %0 = vector.load %arg4[%c0, %c0_0] : memref<4x8xf32, #tpu.memory_space<vmem>>, vector<4x8xf32>
    %c0_1 = arith.constant 0 : index
    %c0_2 = arith.constant 0 : index
    %c0_3 = arith.constant 0 : index
    %1 = vector.load %arg1[%c0_1, %c0_2, %c0_3] : memref<1x8x256xf32, #tpu.memory_space<vmem>>, vector<1x8x256xf32>
    %2 = vector.shape_cast %1 : vector<1x8x256xf32> to vector<8x256xf32>
    %cst = arith.constant dense<0.000000e+00> : vector<4x256xf32>
    %3 = tpu.matmul %0, %2, %cst {dimension_numbers = #tpu.dot_dimension_numbers<[1], [0], [0], [1], [0, 0, 1, 1], [], []>} : vector<4x8xf32>, vector<8x256xf32>, vector<4x256xf32> -> vector<4x256xf32>
    %cst_4 = arith.constant dense<0.000000e+00> : vector<4xf32>
    %4 = vector.multi_reduction <add>, %3, %cst_4 [1] : vector<4x256xf32> to vector<4xf32>
    %5 = vector.shape_cast %4 : vector<4xf32> to vector<4x1xf32>
    %cst_5 = arith.constant 3.906250e-03 : f32
    %6 = vector.broadcast %cst_5 : f32 to vector<4x1xf32>
    %7 = arith.mulf %5, %6 : vector<4x1xf32>
    %8 = arith.mulf %3, %3 : vector<4x256xf32>
    %cst_6 = arith.constant dense<0.000000e+00> : vector<4xf32>
    %9 = vector.multi_reduction <add>, %8, %cst_6 [1] : vector<4x256xf32> to vector<4xf32>
    %10 = vector.shape_cast %9 : vector<4xf32> to vector<4x1xf32>
    %cst_7 = arith.constant 3.906250e-03 : f32
    %11 = vector.broadcast %cst_7 : f32 to vector<4x1xf32>
    %12 = arith.mulf %10, %11 : vector<4x1xf32>
    %13 = arith.mulf %7, %7 : vector<4x1xf32>
    %14 = arith.subf %12, %13 : vector<4x1xf32>
    %cst_8 = arith.constant 9.99999974E-6 : f32
    %15 = vector.broadcast %cst_8 : f32 to vector<4x1xf32>
    %16 = arith.addf %14, %15 : vector<4x1xf32>
    %cst_9 = arith.constant 9.99999974E-6 : f32
    %17 = vector.broadcast %cst_9 : f32 to vector<4x1xf32>
    %18 = arith.addf %16, %17 : vector<4x1xf32>
    %19 = math.rsqrt %18 : vector<4x1xf32>
    %c0_10 = arith.constant 0 : index
    %c0_11 = arith.constant 0 : index
    %c0_12 = arith.constant 0 : index
    %20 = vector.load %arg2[%c0_10, %c0_11, %c0_12] : memref<1x4x1xf32, #tpu.memory_space<vmem>>, vector<1x4x1xf32>
    %21 = vector.shape_cast %20 : vector<1x4x1xf32> to vector<4x1xf32>
    %22 = arith.mulf %21, %19 : vector<4x1xf32>
    %23 = vector.broadcast %7 : vector<4x1xf32> to vector<4x256xf32>
    %24 = arith.subf %3, %23 : vector<4x256xf32>
    %25 = vector.broadcast %22 : vector<4x1xf32> to vector<4x256xf32>
    %26 = arith.mulf %24, %25 : vector<4x256xf32>
    %c0_13 = arith.constant 0 : index
    %c0_14 = arith.constant 0 : index
    %27 = vector.load %arg5[%c0_13, %c0_14] : memref<8x4xf32, #tpu.memory_space<vmem>>, vector<8x4xf32>
    %cst_15 = arith.constant dense<0.000000e+00> : vector<8x256xf32>
    %28 = tpu.matmul %27, %26, %cst_15 {dimension_numbers = #tpu.dot_dimension_numbers<[1], [0], [0], [1], [0, 0, 1, 1], [], []>} : vector<8x4xf32>, vector<4x256xf32>, vector<8x256xf32> -> vector<8x256xf32>
    %c0_16 = arith.constant 0 : index
    %c0_17 = arith.constant 0 : index
    %c0_18 = arith.constant 0 : index
    %29 = vector.load %arg1[%c0_16, %c0_17, %c0_18] : memref<1x8x256xf32, #tpu.memory_space<vmem>>, vector<1x8x256xf32>
    %30 = vector.shape_cast %29 : vector<1x8x256xf32> to vector<8x256xf32>
    %31 = arith.addf %30, %28 : vector<8x256xf32>
    %c0_19 = arith.constant 0 : index
    %c0_20 = arith.constant 0 : index
    %c0_21 = arith.constant 0 : index
    %32 = vector.load %arg3[%c0_19, %c0_20, %c0_21] : memref<1x8x1xf32, #tpu.memory_space<vmem>>, vector<1x8x1xf32>
    %33 = vector.shape_cast %32 : vector<1x8x1xf32> to vector<8x1xf32>
    %34 = vector.broadcast %33 : vector<8x1xf32> to vector<8x256xf32>
    %35 = arith.addf %31, %34 : vector<8x256xf32>
    %c0_22 = arith.constant 0 : index
    %c0_23 = arith.constant 0 : index
    %c0_24 = arith.constant 0 : index
    %36 = vector.load %arg6[%c0_22, %c0_23, %c0_24] : memref<1x8x256xf32, #tpu.memory_space<vmem>>, vector<1x8x256xf32>
    %37 = vector.shape_cast %36 : vector<1x8x256xf32> to vector<8x256xf32>
    %38 = vector.shape_cast %35 : vector<8x256xf32> to vector<1x8x256xf32>
    tpu.vector_store %arg6[%c0_22, %c0_23, %c0_24], %38 {strides = array<i32>} : memref<1x8x256xf32, #tpu.memory_space<vmem>>, vector<1x8x256xf32>,
    return
  }
  func.func @transform_0(%arg0: i32) -> (i32, i32, i32) {
    %c0_i32 = arith.constant 0 : i32
    %c0_i32_0 = arith.constant 0 : i32
    %c0_i32_1 = arith.constant 0 : i32
    return %arg0, %c0_i32, %c0_i32_0 : i32, i32, i32
  }
  func.func @transform_1(%arg0: i32) -> (i32, i32, i32) {
    %c0_i32 = arith.constant 0 : i32
    %c0_i32_0 = arith.constant 0 : i32
    %c0_i32_1 = arith.constant 0 : i32
    return %arg0, %c0_i32, %c0_i32_0 : i32, i32, i32
  }
  func.func @transform_2(%arg0: i32) -> (i32, i32, i32) {
    %c0_i32 = arith.constant 0 : i32
    %c0_i32_0 = arith.constant 0 : i32
    %c0_i32_1 = arith.constant 0 : i32
    return %arg0, %c0_i32, %c0_i32_0 : i32, i32, i32
  }
  func.func @transform_3(%arg0: i32) -> (i32, i32) {
    %c0_i32 = arith.constant 0 : i32
    %c0_i32_0 = arith.constant 0 : i32
    %c0_i32_1 = arith.constant 0 : i32
    return %c0_i32, %c0_i32_0 : i32, i32
  }
  func.func @transform_4(%arg0: i32) -> (i32, i32) {
    %c0_i32 = arith.constant 0 : i32
    %c0_i32_0 = arith.constant 0 : i32
    %c0_i32_1 = arith.constant 0 : i32
    return %c0_i32, %c0_i32_0 : i32, i32
  }
  func.func @transform_5(%arg0: i32) -> (i32, i32, i32) {
    %c0_i32 = arith.constant 0 : i32
    %c0_i32_0 = arith.constant 0 : i32
    %c0_i32_1 = arith.constant 0 : i32
    return %arg0, %c0_i32, %c0_i32_0 : i32, i32, i32
  }
}

</mosaic_0001>

<bundles_post_ra>
// kernel: tpu_custom_call.1
= control target key start
LH: loop header
LB: loop body
LE: loop exit
PB: predicated region body
PF: predicated region fallthrough
CT: control target
= control target key end

     0   :  { %10 = vsyncpa [#allocation3], 0  ;;  %s954_s0 = inlined_call_operand.hbm [shape: f32[2,8,256], index: 0, kind: input, shape index: {}, may-alias: {0,5}]   ;;  %s955_s1 = inlined_call_operand.vmem [shape: f32[2,4,1], index: 1, kind: input, shape index: {}]   ;;  %s956_s2 = inlined_call_operand.vmem [shape: f32[2,8,1], index: 2, kind: input, shape index: {}]   ;;  %s957_s3 = inlined_call_operand.vmem [shape: f32[4,8], index: 3, kind: input, shape index: {}]   ;;  %s958_s4 = inlined_call_operand.vmem [shape: f32[8,4], index: 4, kind: input, shape index: {}]   ;;  %s959_s5 = inlined_call_operand.hbm [shape: f32[2,8,256], index: 5, kind: output, shape index: {}, may-alias: {0,5}]  }
   0x1   :  { %12 = vsyncpa [#allocation3 + $0x1], 0 }
   0x2   :  { %13 = vsyncpa [#allocation4], 0 }
   0x3   :  { %15 = vsyncpa [#allocation4 + $0x1], 0  ;;  %s789_s18 = smov 0   ;;  %s791_s19 = smov 0  }
   0x4   :  { %s793_s20 = smov 0   ;;  %s795_s21 = smov 0  }
   0x5 LB: > { %s810_s22 = sadd.s32 4294967295, %s753_s21   ;;  %s587_s23 = sadd.s32 4294967294, %s753_s21   ;;  %s753_s21 = sphi %s795_s21, %s976_s21   ;;  %s749_s20 = sphi %s793_s20, %s975_s20   ;;  %s745_s19 = sphi %s791_s19, %s974_s19   ;;  %s741_s18 = sphi %s789_s18, %s973_s18  }
   0x6   : > { %s814_s24 = sadd.s32 1, %s753_s21   ;;  %s28_s25 = sadd.s32 1, %s749_s20 }
   0x7   : > { %s25_s26 = ssub.s32 %s753_s21, %s814_s24  ;;  %p35_p0 = scmp.ne.s32.totalorder %s749_s20, %s745_s19 }
   0x8   : > { %p26_p1 = scmp.eq.s32.totalorder %s25_s26, 0  ;;  %p36_p2 = scmp.eq.s32.totalorder %s753_s21, 0 }
   0x9   : > { %p41_p3 = scmp.ne.s32.totalorder %s745_s19, %s741_s18  ;;  %p42_p4 = scmp.eq.s32.totalorder %s810_s22, 0 }
   0xa   : > { %s826_s27 = scalar_select %p26_p1, %s749_s20, %s28_s25  }
   0xb   : > { %p828_p5 = por %p36_p2, %p35_p0  ;;  %p832_p6 = por %p42_p4, %p41_p3 }
   0xc   : > { %p159_p7 = scmp.eq.s32.totalorder %s810_s22, 1  ;;  %p165_p8 = scmp.eq.s32.totalorder %s587_s23, 1 }
   0xd   : > { %s963_s29 = scalar_select %p832_p6, 1, 0 }
   0xe   : > { %p621_p10 = scmp.lt.s32.totalorder %s753_s21, 2  ;;  %p839_p11 = por %p159_p7, %p35_p0 }
   0xf   : > { %p843_p12 = por %p165_p8, %p41_p3  ;;  %s191_s7 = sand.u32 1, %s749_s20  }
  0x10   : > { %s964_s30 = scalar_select %p839_p11, 1, 0 }
  0x11   : > { %s965_s6 = scalar_select %p843_p12, 1, 0 }
  0x12   : > { %s607_s8 = sshll.u32 %s753_s21, 8  ;;  %s590_s9 = sshll.u32 %s191_s7, 4 }
  0x13   : > { %s852_s12 = scalar_lea.hbm %s954_s0, %s607_s8  ;;  %s195_s13 = scalar_lea.vmem [#allocation2], %s590_s9 }
  0x14   : > { %s203_s14 = sshll.u32 %s195_s13, 4  ;;  %p856_p13 = pnand %p621_p10, %p828_p5  ;;  %s860_s14 = int_to_ptr.vmem [resolvable:$true] %s203_s14 }
  0x15   : > { %s192_s16 = scalar_lea.sflag [#allocation3], %s191_s7  ;;  %s661_s17 = scalar_lea.hbm %s852_s12, 256 }
  0x16   : > { %p662_p2 = scmp.ne.s32.totalorder %s852_s12, %s661_s17  ;;  %p663_p3 = pneg %p856_p13 }
  0x17   : > { %s666_s26 = scalar_lea.hbm %s954_s0, 512  ;;  %p667_p5 = scmp.lt.s32.totalorder %s852_s12, %s954_s0 }
  0x18   : > { %p664_p4 = pnand %p663_p3, %p662_p2  ;;  %p668_p8 = scmp.lt.s32.totalorder %s666_s26, %s661_s17 }
  0x1a   : > { %p665_p7 = pneg %p664_p4  ;;  %p669_p10 = por %p668_p8, %p667_p5 }
  0x1c   : > { %p670_p9 = pnand %p669_p10, %p665_p7 }
  0x1e   : > { %673 = shalt.err (!%p670_p9)
}
  0x1f   : > { %s674_s7 = scalar_lea.vmem %s860_s14, 256  ;;  %s755_s9 = smov [#allocation2]  }
  0x20   : > { %p675_p0 = scmp.ne.s32.totalorder %s860_s14, %s674_s7  ;;  %s679_s10 = sshll.u32 %s755_s9, 4  ;;  %s680_s10 = int_to_ptr.vmem [resolvable:$false] %s679_s10 }
  0x21   : > { %s681_s11 = scalar_lea.vmem %s680_s10, 512  ;;  %p682_p4 = scmp.lt.s32.totalorder %s860_s14, %s680_s10 }
  0x22   : > { %p677_p1 = pnand %p675_p0, %p663_p3  ;;  %p683_p12 = scmp.lt.s32.totalorder %s681_s11, %s674_s7 }
  0x24   : > { %p678_p2 = pneg %p677_p1  ;;  %p684_p11 = por %p683_p12, %p682_p4 }
  0x26   : > { %p685_p6 = pnand %p684_p11, %p678_p2 }
  0x28   : > { %688 = shalt.err (!%p685_p6)
}
  0x29   : > { %616 = dma.hbm_to_vmem [thread:$0]  (!%p856_p13), %s852_s12, 256, %s860_s14, %s192_s16  }
  0x2a   : > { %p967_p9 = scmp.lt.s32.totalorder %s753_s21, 3  ;;  %p968_p7 = scmp.ge.s32.totalorder %s753_s21, 1 }
  0x2c   : > { %p223_p0 = pnand %p968_p7, %p967_p9 }
  0x2d   : > { %s887_s13 = sand.u32 (!%p223_p0), 1, %s745_s19   ;;  %p969_p6 = scmp.ne.s32.totalorder (!%p223_p0), %s963_s29, 0 }
  0x2e   : > { %226 = sbr.rel (%p223_p0) target bundleno = 760 (0x2f8), region = 40  ;;  %s594_s17 = sshll.u32 (!%p223_p0), %s887_s13, 4 }
  0x2f   : > { %s229_s23 = scalar_lea.sflag (!%p223_p0), [#allocation3], %s887_s13  ;;  %s232_s15 = scalar_lea.vmem (!%p223_p0), [#allocation2], %s594_s17 }
  0x33   : > { %732 = dma.done.wait (%p969_p6), %s229_s23, 256  }
  0x34   : > { %734 = vsyncadd (%p969_p6), %s229_s23, 4294967040  ;;  %v756_v0 = vmov 0.0   ;;  %v277_v1 = vld [vmem:[%s232_s15 + $0x8] sm:$0xff]  ;;  %v276_v2 = vld [vmem:[%s232_s15] sm:$0xff]  ;;  %vm278_vm0 = vcmask 64512   ;;  %vm353_vm1 = vcmask 1043456  }
  0x35   : > { %346 = vmatprep.mubr.f32.mxu0 %v756_v0  ;;  %459 = vmatprep.mubr.f32.mxu1 %v756_v0  ;;  %v275_v3 = vld [vmem:[%s957_s3] sm:$0xf]  ;;  %v757_v14 = vmov 0   ;;  %p267_p11 = scmp.lt.s32.totalorder %s810_s22, 1  ;;  %vm385_vm2 = vcmask 31744   ;;  %s608_s15 = sshll.u32 %s810_s22, 8 }
  0x36   : > { %312 = vmatprep.subr.mxu0 %v277_v1  ;;  %657 = vset.pattern.permute.xlu1 %v757_v14  ;;  %v384_v32 = vld [vmem:[%s958_s4] sm:$0xff]  ;;  %s266_s12 = scalar_lea.vmem [#allocation5], %s594_s17  ;;  %s491_s25 = scalar_lea.hbm %s959_s5, %s608_s15 }
  0x37   : > { %313 = vmatpush1.msra.mxu0 %v276_v2  ;;  %658 = vset.pattern.permute.xlu0 %v757_v14  ;;  %s268_s29 = scalar_select %p267_p11, %s810_s22, 1 }
  0x38   : > { %598 = vmatmul.mubr.msk.f32.vlgmr.msra.gmra.mxu0 %vm278_vm0, %v275_v3  ;;  %s493_s14 = sshll.u32 %s266_s12, 4  ;;  %s479_s26 = scalar_lea.sflag [#allocation4], %s887_s13  ;;  %s494_s14 = int_to_ptr.vmem [resolvable:$true] %s493_s14 }
  0x39   : > { %s596_s16 = sshll.u32 %s268_s29, 2  ;;  %s597_s8 = sshll.u32 %s268_s29, 3 }
  0x3a   : > { %s270_s28 = scalar_lea.vmem %s955_s1, %s596_s16  ;;  %s274_s10 = scalar_lea.vmem %s956_s2, %s597_s8 }
  0x3b   : > { %v373_v23 = vld [vmem:[%s270_s28] sm:$0xf]  ;;  %s689_s28 = scalar_lea.vmem %s494_s14, 256  ;;  %p970_p13 = scmp.ne.s32.totalorder %s964_s30, 0 }
  0x3c   : > { %v468_v26 = vld [vmem:[%s274_s10] sm:$0xff]  ;;  %p690_p12 = scmp.ne.s32.totalorder %s494_s14, %s689_s28  ;;  %s758_s22 = smov [#allocation5]  }
  0x3d   : > { %s693_s8 = sshll.u32 %s758_s22, 4  ;;  %s694_s8 = int_to_ptr.vmem [resolvable:$false] %s693_s8 }
  0x3e   : > { %p691_p1 = pnand %p690_p12, %p970_p13  ;;  %s695_s17 = scalar_lea.vmem %s694_s8, 512 }
  0x3f   : > { %p696_p5 = scmp.lt.s32.totalorder %s494_s14, %s694_s8  ;;  %p697_p8 = scmp.lt.s32.totalorder %s695_s17, %s689_s28 }
  0x40   : > { %p692_p3 = pneg %p691_p1 }
  0x41   : > { %p698_p10 = por %p697_p8, %p696_p5 }
  0x43   : > { %p699_p2 = pnand %p698_p10, %p692_p3 }
  0xf8   : > { %v348_v4 = vpop.f32.mrf.mxu0 }
  0xf9   : > { %v360_v6 = vmul.f32 %v348_v4, %v348_v4  ;;  %v354_v8 = vsel %vm353_vm1, %v348_v4, 0.0 }
  0xfa   : > { %v350_v5 = vpop.f32.mrf.mxu0 }
  0xfb   : > { %v361_v7 = vmul.f32 %v350_v5, %v350_v5  ;;  %v355_v9 = vsel %vm353_vm1, %v350_v5, 0.0  ;;  %v362_v12 = vsel %vm353_vm1, %v360_v6, 0.0 }
  0xfc   : > { %v356_v10 = vadd.f32 %v355_v9, %v354_v8 }
  0xfd   : > { %v363_v11 = vsel %vm353_vm1, %v361_v7, 0.0 }
  0xfe   : > { %357 = vadd.xlane.f32.xlu0 %v356_v10  ;;  %v364_v13 = vadd.f32 %v363_v11, %v362_v12 }
 0x102   : > { %365 = vadd.xlane.f32.xlu0 %v364_v13 }
 0x187   : > { %v358_v15 = vpop.xlane.xlu0 %357 }
 0x188   : > { %v359_v16 = vmul.f32 0.00390625, %v358_v15 }
 0x18a   : > { %v368_v18 = vmul.f32 %v359_v16, %v359_v16  ;;  %v375_v27 = vsub.f32 %v348_v4, %v359_v16  ;;  %v376_v28 = vsub.f32 %v350_v5, %v359_v16 }
 0x18b   : > { %v366_v17 = vpop.xlane.xlu0 %365 }
 0x18c   : > { %v367_v19 = vmul.f32 0.00390625, %v366_v17 }
 0x18e   : > { %v369_v20 = vsub.f32 %v367_v19, %v368_v18 }
 0x190   : > { %v370_v21 = vadd.f32 1e-05, %v369_v20 }
 0x192   : > { %v371_v22 = vadd.f32 1e-05, %v370_v21 }
 0x194   : > { %659 = vrsqrt.f32 %v371_v22 }
 0x1a1   : > { %v660_v24 = vpop.eup %659 }
 0x1a2   : > { %v374_v25 = vmul.f32 %v660_v24, %v373_v23 }
 0x1a4   : > { %379 = vperm.xlu1 %657, %v374_v25  }
 0x1a8   : > { %471 = vperm.xlu1 %657, %v468_v26  }
 0x21f   : > { %v380_v29 = vpop.permute.xlu1 %379 }
 0x220   : > { %v382_v30 = vmul.f32 %v380_v29, %v375_v27  ;;  %v383_v31 = vmul.f32 %v380_v29, %v376_v28 }
 0x222   : > { %599 = vmatprep.subr.msk.mxu1 %vm353_vm1, %v383_v31 }
 0x223   : > { %600 = vmatpush1.msk.msra.mxu1 %vm353_vm1, %v382_v30  ;;  %v472_v35 = vpop.permute.xlu1 %471 }
 0x224   : > { %601 = vmatmul.mubr.msk.f32.vlgmr.msra.gmra.mxu1 %vm385_vm2, %v384_v32 }
 0x2e4   : > { %v461_v33 = vpop.f32.mrf.mxu1 }
 0x2e5   : > { %v466_v34 = vadd.f32 %v461_v33, %v276_v2 }
 0x2e6   : > { %v463_v36 = vpop.f32.mrf.mxu1 }
 0x2e7   : > { %v474_v37 = vadd.f32 %v472_v35, %v466_v34  ;;  %v467_v38 = vadd.f32 %v463_v36, %v277_v1 }
 0x2e9   : > { %476 = vst [vmem:[%s266_s12] sm:$0xff] %v474_v37  ;;  %v475_v39 = vadd.f32 %v472_v35, %v467_v38 }
 0x2eb   : > { %477 = vst [vmem:[%s266_s12 + $0x8] sm:$0xff] %v475_v39 }
 0x2ec   : > { %702 = shalt.err (!%p699_p2)
}
 0x2ed   : > { %s703_s7 = scalar_lea.hbm %s491_s25, 256  ;;  %s707_s10 = scalar_lea.hbm %s959_s5, 512 }
 0x2ee   : > { %p704_p4 = scmp.ne.s32.totalorder %s491_s25, %s703_s7  ;;  %p708_p0 = scmp.lt.s32.totalorder %s491_s25, %s959_s5 }
 0x2ef   : > { %p709_p6 = scmp.lt.s32.totalorder %s707_s10, %s703_s7 }
 0x2f0   : > { %p705_p9 = pnand %p704_p4, %p970_p13 }
 0x2f1   : > { %p710_p11 = por %p709_p6, %p708_p0 }
 0x2f2   : > { %p706_p7 = pneg %p705_p9 }
 0x2f4   : > { %p711_p12 = pnand %p710_p11, %p706_p7 }
 0x2f6   : > { %714 = shalt.err (!%p711_p12)
}
 0x2f7   : > { %611 = dma.vmem_to_hbm [thread:$0]  (%p970_p13), %s494_s14, 256, %s491_s25, %s479_s26  }
 0x2f8 PF: > { %s505_s15 = sand.u32 1, %s741_s18   ;;  %p971_p1 = scmp.ne.s32.totalorder %s965_s6, 0 }
 0x2f9   : > { %p972_p3 = scmp.ge.s32.totalorder %s753_s21, 2  ;;  %s506_s12 = scalar_lea.sflag [#allocation4], %s505_s15 }
 0x2fb   : > { %p618_p5 = pnand %p972_p3, %p971_p1 }
 0x2fd   : > { %p619_p8 = pneg %p618_p5 }
 0x2ff   : > { %736 = dma.done.wait (%p619_p8), %s506_s12, 256  }
 0x300   : > { %738 = vsyncadd (%p619_p8), %s506_s12, 4294967040  ;;  %p18_p10 = scmp.ge.s32.totalorder %s814_s24, 4   ;;  %s973_s18 = smov %s745_s19 }
 0x301   : > { %s974_s19 = smov %s749_s20  ;;  %s975_s20 = smov %s826_s27 }
 0x302   : > { %s976_s21 = smov %s814_s24  ;;  %20 = sbr.rel (!%p18_p10) target bundleno = 5 (0x5), region = 91 }
 0x307   :  { %511 = vsyncpa [#allocation3], 1 }
 0x308   :  { %513 = vsyncpa [#allocation3 + $0x1], 1 }
 0x309   :  { %514 = vsyncpa [#allocation4], 1 }
 0x30a   :  { %516 = vsyncpa [#allocation4 + $0x1], 1 }

</bundles_post_ra>
